<compile_context>
chip_gen: v7x
topology: tpu7x:2x2x1
jax: 0.10.0
libtpu: 0.0.40
codegen_flags: <defaults>
</compile_context>

<pallas_src>
import functools

import jax
import jax.numpy as jnp
import numpy as np
from jax.experimental import pallas as pl
from jax.experimental.pallas import tpu as pltpu


def _round_up(x, m):
    return (x + m - 1) // m * m


def _vmem_capacity_bytes():
    try:
        return int(pltpu.get_tpu_info().vmem_capacity_bytes)
    except Exception:
        return 64 << 20  # conservative default (v7x per-core VMEM)


def _mean_edges_kernel(seg_ref, feat_ref, out_ref, acc_ref, cnt_ref, *,
                       tile_e, num_edges, num_graphs, chunk_g, approx_recip):
    """grid = (D tiles [parallel], edge tiles [arbitrary reduction])."""
    e_idx = pl.program_id(1)

    @pl.when(e_idx == 0)
    def _():
        acc_ref[...] = jnp.zeros_like(acc_ref)
        cnt_ref[...] = jnp.zeros_like(cnt_ref)

    feat = feat_ref[...]                       # (tile_e, tile_d), native dtype
    seg = seg_ref[...]                         # (1, tile_e) int32

    # Sanitize rows past E: the feature array is streamed unpadded, so the
    # last tile's tail holds arbitrary VMEM bytes and 0 * NaN = NaN otherwise.
    if num_edges % tile_e != 0:
        row = (jax.lax.broadcasted_iota(jnp.int32, (tile_e, 1), 0)
               + e_idx * tile_e)
        feat = jnp.where(row < num_edges, feat, jnp.zeros_like(feat))

    g_pad = acc_ref.shape[0]
    n_chunks = g_pad // chunk_g

    def one_chunk(c):
        goff = c * chunk_g
        if not isinstance(goff, int):
            goff = pl.multiple_of(goff, chunk_g)
        giota = (jax.lax.broadcasted_iota(jnp.int32, (chunk_g, tile_e), 0)
                 + goff)
        mask = giota == seg                    # (chunk_g, tile_e); padded edges
        onehot = mask.astype(feat.dtype)       # carry an out-of-range id -> 0
        # Segment-sum on the MXU, f32 accumulation (exact 0/1 one-hot).
        acc_ref[pl.ds(goff, chunk_g), :] += jnp.dot(
            onehot, feat, preferred_element_type=jnp.float32)
        # Counts: XLU lane reduce, hides under the MXU matmul.  (Recomputed per
        # D tile when n_d > 1 -- cheap filler, kept for megacore safety.)
        cnt_ref[pl.ds(goff, chunk_g), :] += jnp.sum(
            mask.astype(jnp.float32), axis=1, keepdims=True)

    if n_chunks == 1:
        one_chunk(0)
    else:
        def body(c, carry):
            one_chunk(c)
            return carry
        jax.lax.fori_loop(0, n_chunks, body, 0)

    @pl.when(e_idx == pl.num_programs(1) - 1)
    def _():
        acc = acc_ref[:num_graphs, :]
        cnt = cnt_ref[:num_graphs, :]
        # f32 counts are exact up to 2**24 edges per graph.
        inv = pl.reciprocal(jnp.maximum(cnt, 1.0), approx=approx_recip)
        out_ref[...] = (acc * inv).astype(out_ref.dtype)


@functools.partial(jax.jit, static_argnames=("num_graphs", "tile_e", "tile_d"))
def avg_pooling_edges(edge_feat, edge_graph_ids, *, num_graphs,
                      tile_e=1024, tile_d=None):
    """edge_feat: [E, D]; edge_graph_ids: [E] int32 in [0, num_graphs)."""
    E, D = edge_feat.shape
    dtype = edge_feat.dtype
    itemsize = jnp.dtype(dtype).itemsize

    if E == 0:  # edge-less batch: dgl.mean_edges readout is all zeros.
        return jnp.zeros((num_graphs, D), dtype)

    # ---- D tiling: never lane-pad; split D when possible for v7x megacore ----
    if tile_d is None:
        if D % 128 == 0 and D >= 256:
            tile_d = max(t for t in (512, 384, 256, 128)
                         if D % t == 0 and t <= D // 2)
        else:
            tile_d = D            # full-extent last dim is a legal block
    assert tile_d == D or (tile_d % 128 == 0 and D % tile_d == 0)
    n_d = D // tile_d

    # ---- graph-row chunking (bounds one-hot vreg/VMEM live set & matmul M) ----
    g_pad = max(8, _round_up(num_graphs, 8))
    if g_pad > 256:
        chunk_g = 256
        g_pad = _round_up(g_pad, chunk_g)
    else:
        chunk_g = g_pad

    # ---- edge tiling bounded by a generation-aware VMEM budget ----
    vmem_cap = _vmem_capacity_bytes()
    feat_budget = vmem_cap // 4           # feat double buffer <= ~25% of VMEM
    tile_e = max(128, _round_up(int(tile_e), 128))
    tile_e = min(tile_e, _round_up(E, 128))       # don't over-pad tiny E
    while tile_e > 128 and 2 * tile_e * tile_d * itemsize > feat_budget:
        tile_e = max(128, (tile_e // 2) // 128 * 128)

    e_pad = _round_up(E, tile_e)
    n_e = e_pad // tile_e

    # ---- JAX glue: only the 4-byte/edge id row is padded (sentinel = g_pad
    # is out of iota range, so padded edges contribute nothing). ----
    seg_p = jnp.full((1, e_pad), g_pad, jnp.int32).at[0, :E].set(
        edge_graph_ids.astype(jnp.int32))

    vmem_est = (2 * tile_e * tile_d * itemsize        # feat double buffer
                + 2 * tile_e * 4                      # seg id double buffer
                + 2 * num_graphs * tile_d * itemsize  # output double buffer
                + g_pad * tile_d * 4                  # f32 accumulator
                + g_pad * 128 * 4                     # counts (lane padded)
                + chunk_g * tile_e * (8 + itemsize))  # iota/mask/one-hot temps
    vmem_limit = int(min(max(3 * vmem_est, 16 << 20), (vmem_cap * 5) // 8))

    kernel = functools.partial(
        _mean_edges_kernel, tile_e=tile_e, num_edges=E, num_graphs=num_graphs,
        chunk_g=chunk_g, approx_recip=bool(dtype == jnp.bfloat16))

    out = pl.pallas_call(
        kernel,
        out_shape=jax.ShapeDtypeStruct((num_graphs, D), dtype),
        grid_spec=pltpu.PrefetchScalarGridSpec(
            num_scalar_prefetch=0,
            grid=(n_d, n_e),                 # (parallel D tiles, edge reduce)
            in_specs=[
                pl.BlockSpec((1, tile_e), lambda d, e: (0, e)),       # seg ids
                pl.BlockSpec((tile_e, tile_d), lambda d, e: (e, d)),  # features
            ],
            out_specs=pl.BlockSpec((num_graphs, tile_d), lambda d, e: (0, d)),
            scratch_shapes=[
                pltpu.VMEM((g_pad, tile_d), jnp.float32),   # feature sums
                pltpu.VMEM((g_pad, 1), jnp.float32),        # edge counts
            ],
        ),
        compiler_params=pltpu.CompilerParams(
            dimension_semantics=("parallel", "arbitrary"),
            vmem_limit_bytes=vmem_limit,
        ),
    )(seg_p, edge_feat)
    return out


def _ref_mean_edges(feat, ids, num_graphs):
    feat32 = feat.astype(jnp.float32)
    s = jax.ops.segment_sum(feat32, ids, num_graphs)
    c = jax.ops.segment_sum(jnp.ones((feat.shape[0], 1), jnp.float32),
                            ids, num_graphs)
    return jnp.where(c > 0, s / jnp.maximum(c, 1.0), 0.0)


if __name__ == "__main__":
    key = jax.random.PRNGKey(0)
    k1, k2, k3, k4 = jax.random.split(key, 4)

    # Case 1: small batched graph (incl. an empty graph), narrow D=32, f32.
    # Features streamed unpadded (block last dim == D), single edge tile.
    num_graphs = 4
    edges_per_graph = [10, 0, 35, 49]
    D = 32
    ids1 = jnp.concatenate(
        [jnp.full((n,), g, jnp.int32) for g, n in enumerate(edges_per_graph)])
    feat1 = jax.random.normal(k1, (int(ids1.shape[0]), D), jnp.float32)
    out1 = jax.block_until_ready(
        avg_pooling_edges(feat1, ids1, num_graphs=num_graphs))
    ref1 = _ref_mean_edges(feat1, ids1, num_graphs)
    assert out1.shape == (num_graphs, D)
    assert np.allclose(np.asarray(out1), np.asarray(ref1), atol=1e-4, rtol=1e-4)

    # Case 2: bf16 features -> bf16 MXU fast path + approx-reciprocal epilogue.
    out2 = jax.block_until_ready(
        avg_pooling_edges(feat1.astype(jnp.bfloat16), ids1,
                          num_graphs=num_graphs))
    assert np.allclose(np.asarray(out2, dtype=np.float32), np.asarray(ref1),
                       atol=3e-2, rtol=3e-2)

    # Case 3: D=256 -> two parallel D tiles; several edge-reduction steps with
    # a partial last edge tile (exercises the in-kernel row-validity mask).
    edges3 = [50, 0, 90, 160]
    D3 = 256
    ids3 = jnp.concatenate(
        [jnp.full((n,), g, jnp.int32) for g, n in enumerate(edges3)])
    feat3 = jax.random.normal(k3, (int(ids3.shape[0]), D3), jnp.float32)
    out3 = jax.block_until_ready(
        avg_pooling_edges(feat3, ids3, num_graphs=4, tile_e=128))
    ref3 = _ref_mean_edges(feat3, ids3, 4)
    assert np.allclose(np.asarray(out3), np.asarray(ref3), atol=1e-4, rtol=1e-4)

    # Case 4: many graphs -> graph-chunked one-hot (fori_loop, 256-row chunks),
    # large edge tile kept intact.
    num_graphs4 = 300
    E4 = 1500
    ids4 = jax.random.randint(k4, (E4,), 0, num_graphs4, jnp.int32)
    feat4 = jax.random.normal(k2, (E4, 64), jnp.float32)
    out4 = jax.block_until_ready(
        avg_pooling_edges(feat4, ids4, num_graphs=num_graphs4))
    ref4 = _ref_mean_edges(feat4, ids4, num_graphs4)
    assert np.allclose(np.asarray(out4), np.asarray(ref4), atol=1e-3, rtol=1e-3)

    # Case 5: zero-edge batch -> all-zero readout (wrapper guard).
    out5 = jax.block_until_ready(
        avg_pooling_edges(jnp.zeros((0, 16), jnp.float32),
                          jnp.zeros((0,), jnp.int32), num_graphs=3))
    assert out5.shape == (3, 16) and not np.any(np.asarray(out5))

    print("KERNEL_OK")
</pallas_src>

<mosaic_0001>
module attributes {stable_mosaic.version = 11 : i64} {
  func.func @_mean_edges_kernel(%arg0: i32, %arg1: i32, %arg2: memref<1x128xi32, #tpu.memory_space<vmem>>, %arg3: memref<128x32xf32, #tpu.memory_space<vmem>>, %arg4: memref<4x32xf32, #tpu.memory_space<vmem>>, %arg5: memref<8x32xf32, #tpu.memory_space<vmem>>, %arg6: memref<8x1xf32, #tpu.memory_space<vmem>>) attributes {dimension_semantics = [#tpu.dimension_semantics<parallel>, #tpu.dimension_semantics<arbitrary>], iteration_bounds = array<i64: 1, 1>, scalar_prefetch = 0 : i64, scratch_operands = 2 : i64, tpu.core_type = #tpu.core_type<tc>, window_params = [{transform_indices = @transform_0, window_bounds = array<i64: 1, 128>}, {transform_indices = @transform_1, window_bounds = array<i64: 128, 32>}, {transform_indices = @transform_2, window_bounds = array<i64: 4, 32>}]} {
    %c0_i32 = arith.constant 0 : i32
    %0 = arith.cmpi eq, %arg1, %c0_i32 : i32
    %1 = arith.extui %0 : i1 to i32
    %c0_i32_0 = arith.constant 0 : i32
    %2 = arith.cmpi ne, %1, %c0_i32_0 : i32
    scf.if %2 {
      %cst_17 = arith.constant 0.000000e+00 : f32
      %36 = vector.broadcast %cst_17 : f32 to vector<8x32xf32>
      %c0_18 = arith.constant 0 : index
      %c0_19 = arith.constant 0 : index
      %37 = vector.load %arg5[%c0_18, %c0_19] : memref<8x32xf32, #tpu.memory_space<vmem>>, vector<8x32xf32>
      tpu.vector_store %arg5[%c0_18, %c0_19], %36 {strides = array<i32>} : memref<8x32xf32, #tpu.memory_space<vmem>>, vector<8x32xf32>,
      %cst_20 = arith.constant 0.000000e+00 : f32
      %38 = vector.broadcast %cst_20 : f32 to vector<8x1xf32>
      %c0_21 = arith.constant 0 : index
      %c0_22 = arith.constant 0 : index
      %39 = vector.load %arg6[%c0_21, %c0_22] : memref<8x1xf32, #tpu.memory_space<vmem>>, vector<8x1xf32>
      tpu.vector_store %arg6[%c0_21, %c0_22], %38 {strides = array<i32>} : memref<8x1xf32, #tpu.memory_space<vmem>>, vector<8x1xf32>,
    } else {
    }
    %c0 = arith.constant 0 : index
    %c0_1 = arith.constant 0 : index
    %3 = vector.load %arg3[%c0, %c0_1] : memref<128x32xf32, #tpu.memory_space<vmem>>, vector<128x32xf32>
    %c0_2 = arith.constant 0 : index
    %c0_3 = arith.constant 0 : index
    %4 = vector.load %arg2[%c0_2, %c0_3] : memref<1x128xi32, #tpu.memory_space<vmem>>, vector<1x128xi32>
    %5 = tpu.iota {dimensions = array<i32: 0>} : vector<128x1xi32>
    %c128_i32 = arith.constant 128 : i32
    %6 = arith.muli %arg1, %c128_i32 : i32
    %7 = vector.broadcast %6 : i32 to vector<128x1xi32>
    %8 = arith.addi %5, %7 : vector<128x1xi32>
    %c94_i32 = arith.constant 94 : i32
    %9 = vector.broadcast %c94_i32 : i32 to vector<128x1xi32>
    %10 = arith.cmpi slt, %8, %9 : vector<128x1xi32>
    %cst = arith.constant 0.000000e+00 : f32
    %11 = vector.broadcast %cst : f32 to vector<128x32xf32>
    %12 = vector.shape_cast %10 : vector<128x1xi1> to vector<128x1xi1>
    %13 = vector.broadcast %12 : vector<128x1xi1> to vector<128x32xi1>
    %14 = arith.select %13, %3, %11 : vector<128x32xi1>, vector<128x32xf32>
    %15 = tpu.iota {dimensions = array<i32: 0>} : vector<8x128xi32>
    %c0_i32_4 = arith.constant 0 : i32
    %16 = vector.broadcast %c0_i32_4 : i32 to vector<8x128xi32>
    %17 = arith.addi %15, %16 : vector<8x128xi32>
    %18 = vector.broadcast %4 : vector<1x128xi32> to vector<8x128xi32>
    %19 = arith.cmpi eq, %17, %18 : vector<8x128xi32>
    %20 = arith.extui %19 : vector<8x128xi1> to vector<8x128xi32>
    %21 = arith.sitofp %20 : vector<8x128xi32> to vector<8x128xf32>
    %c0_5 = arith.constant 0 : index
    %c0_6 = arith.constant 0 : index
    %22 = vector.load %arg5[%c0_5, %c0_6] : memref<8x32xf32, #tpu.memory_space<vmem>>, vector<8x32xf32>
    %cst_7 = arith.constant dense<0.000000e+00> : vector<8x32xf32>
    %23 = tpu.matmul %21, %14, %cst_7 {dimension_numbers = #tpu.dot_dimension_numbers<[1], [0], [0], [1], [0, 0, 1, 1], [], []>} : vector<8x128xf32>, vector<128x32xf32>, vector<8x32xf32> -> vector<8x32xf32>
    %24 = arith.addf %22, %23 : vector<8x32xf32>
    %c0_8 = arith.constant 0 : index
    %c0_9 = arith.constant 0 : index
    %25 = vector.load %arg5[%c0_8, %c0_9] : memref<8x32xf32, #tpu.memory_space<vmem>>, vector<8x32xf32>
    tpu.vector_store %arg5[%c0_8, %c0_9], %24 {strides = array<i32>} : memref<8x32xf32, #tpu.memory_space<vmem>>, vector<8x32xf32>,
    %c0_10 = arith.constant 0 : index
    %c0_11 = arith.constant 0 : index
    %26 = vector.load %arg6[%c0_10, %c0_11] : memref<8x1xf32, #tpu.memory_space<vmem>>, vector<8x1xf32>
    %27 = arith.extui %19 : vector<8x128xi1> to vector<8x128xi32>
    %28 = arith.sitofp %27 : vector<8x128xi32> to vector<8x128xf32>
    %cst_12 = arith.constant dense<0.000000e+00> : vector<8xf32>
    %29 = vector.multi_reduction <add>, %28, %cst_12 [1] : vector<8x128xf32> to vector<8xf32>
    %30 = vector.shape_cast %29 : vector<8xf32> to vector<8x1xf32>
    %31 = arith.addf %26, %30 : vector<8x1xf32>
    %c0_13 = arith.constant 0 : index
    %c0_14 = arith.constant 0 : index
    %32 = vector.load %arg6[%c0_13, %c0_14] : memref<8x1xf32, #tpu.memory_space<vmem>>, vector<8x1xf32>
    tpu.vector_store %arg6[%c0_13, %c0_14], %31 {strides = array<i32>} : memref<8x1xf32, #tpu.memory_space<vmem>>, vector<8x1xf32>,
    %c0_i32_15 = arith.constant 0 : i32
    %33 = arith.cmpi eq, %arg1, %c0_i32_15 : i32
    %34 = arith.extui %33 : i1 to i32
    %c0_i32_16 = arith.constant 0 : i32
    %35 = arith.cmpi ne, %34, %c0_i32_16 : i32
    scf.if %35 {
      %c0_17 = arith.constant 0 : index
      %c0_18 = arith.constant 0 : index
      %36 = vector.load %arg5[%c0_17, %c0_18] : memref<8x32xf32, #tpu.memory_space<vmem>>, vector<4x32xf32>
      %c0_19 = arith.constant 0 : index
      %c0_20 = arith.constant 0 : index
      %37 = vector.load %arg6[%c0_19, %c0_20] : memref<8x1xf32, #tpu.memory_space<vmem>>, vector<4x1xf32>
      %cst_21 = arith.constant 1.000000e+00 : f32
      %38 = vector.broadcast %cst_21 : f32 to vector<4x1xf32>
      %39 = arith.maximumf %37, %38 : vector<4x1xf32>
      %40 = tpu.reciprocal %39 : vector<4x1xf32> -> vector<4x1xf32>
      %41 = vector.broadcast %40 : vector<4x1xf32> to vector<4x32xf32>
      %42 = arith.mulf %36, %41 : vector<4x32xf32>
      %c0_22 = arith.constant 0 : index
      %c0_23 = arith.constant 0 : index
      %43 = vector.load %arg4[%c0_22, %c0_23] : memref<4x32xf32, #tpu.memory_space<vmem>>, vector<4x32xf32>
      tpu.vector_store %arg4[%c0_22, %c0_23], %42 {strides = array<i32>} : memref<4x32xf32, #tpu.memory_space<vmem>>, vector<4x32xf32>,
    } else {
    }
    return
  }
  func.func @transform_0(%arg0: i32, %arg1: i32) -> (i32, i32) {
    %c0_i32 = arith.constant 0 : i32
    %c0_i32_0 = arith.constant 0 : i32
    return %c0_i32, %arg1 : i32, i32
  }
  func.func @transform_1(%arg0: i32, %arg1: i32) -> (i32, i32) {
    %c0_i32 = arith.constant 0 : i32
    return %arg1, %arg0 : i32, i32
  }
  func.func @transform_2(%arg0: i32, %arg1: i32) -> (i32, i32) {
    %c0_i32 = arith.constant 0 : i32
    %c0_i32_0 = arith.constant 0 : i32
    return %c0_i32, %arg0 : i32, i32
  }
}

</mosaic_0001>

<bundles_post_ra>
// kernel: avg_pooling_edges.1
= control target key start
LH: loop header
LB: loop body
LE: loop exit
PB: predicated region body
PF: predicated region fallthrough
CT: control target
= control target key end

     0   :  { %vm18_vm0 = vcmask 7168   ;;  %v37_v1 = vlaneseq  ;;  %vm16_vm1 = vcmask 261120   ;;  %v349_v3 = vmov 0.0   ;;  %s428_s0 = inlined_call_operand.vmem [shape: s32[1,128], index: 0, kind: input, shape index: {}]   ;;  %s429_s1 = inlined_call_operand.vmem [shape: f32[94,32], index: 1, kind: input, shape index: {}]   ;;  %s430_s2 = inlined_call_operand.hbm [shape: f32[4,32], index: 2, kind: output, shape index: {}]  }
   0x1   :  { %v252_v0 = vld [vmem:[%s428_s0] ss:$0 sm:$0xff]  ;;  %17 = vst.msk [vmem:[#allocation2] sm:$0xff] %vm16_vm1, %v349_v3  ;;  %v21_v4 = vld [vmem:[%s429_s1 + $0x8] sm:$0xff]  ;;  %v22_v5 = vld [vmem:[%s429_s1 + $0x10] sm:$0xff]  ;;  %v350_v8 = vmov 0.0|0.0  }
   0x2   :  { %v20_v2 = vld [vmem:[%s429_s1] sm:$0xff]  ;;  %19 = vst.msk [vmem:[#allocation3] sm:$0xff] %vm18_vm0, %v349_v3  ;;  %v23_v6 = vld [vmem:[%s429_s1 + $0x18] sm:$0xff]  ;;  %v38_v7 = vshrl.u32 %v37_v1, 7  ;;  %296 = vmatprep.subr.bf16.mxu0 %v350_v8  ;;  %vm351_vm2 = vmmov 0  }
   0x3   :  { %v297_v9 = vpack.c.bf16 %v21_v4, %v20_v2  ;;  %293 = vmatprep.mubr.msk.f32.mxu0 %vm351_vm2, %v349_v3  ;;  %v300_v10 = vpack.c.bf16 %v23_v6, %v22_v5 }
   0x4   :  { %vm140_vm3 = vcmp.eq.s32.totalorder %v38_v7, %v252_v0 }
   0x5   :  { %298 = vmatpush3.bf16.msra.mxu0 %v297_v9 }
   0x6   :  { %7 = vsyncpa [#allocation5], 0  ;;  %v253_v11 = vsel %vm140_vm3, 1.0, %v349_v3  ;;  %299 = vmatprep.subr.bf16.mxu0 %v350_v8  ;;  %v24_v12 = vld [vmem:[%s429_s1 + $0x20] sm:$0xff]  ;;  %v25_v13 = vld [vmem:[%s429_s1 + $0x28] sm:$0xff]  ;;  %v49_v20 = vadd.s32 88, %v38_v7 }
   0x7   :  { %218 = vadd.xlane.f32.xlu0 %v253_v11  ;;  %v303_v14 = vpack.c.bf16 %v25_v13, %v24_v12  ;;  %v26_v15 = vld [vmem:[%s429_s1 + $0x30] sm:$0xff]  ;;  %v27_v16 = vld [vmem:[%s429_s1 + $0x38] sm:$0xff]  ;;  %v28_v18 = vld [vmem:[%s429_s1 + $0x40] sm:$0xff]  ;;  %vm352_vm5 = vmmov 1   ;;  %v353_v25 = vmov 0   ;;  %v354_v26 = vmov 1.0  }
   0x8   :  { %v306_v17 = vpack.c.bf16 %v27_v16, %v26_v15  ;;  %v29_v19 = vld [vmem:[%s429_s1 + $0x48] sm:$0xff]  ;;  %v30_v22 = vld [vmem:[%s429_s1 + $0x50] sm:$0xff]  ;;  %v31_v23 = vld [vmem:[%s429_s1 + $0x58] sm:$0xff]  ;;  %vm83_vm4 = vcmp.lt.s32.totalorder %v49_v20, 94  ;;  %322 = vset.pattern.permute.xlu0 %v353_v25  ;;  %s355_s1 = smov [#allocation4]   ;;  %vm236_vm7 = vcmask 257024  }
   0x9   :  { %301 = vmatpush3.bf16.msra.mxu0 %v300_v10  ;;  %v309_v21 = vpack.c.bf16 %v29_v19, %v28_v18  ;;  %v312_v24 = vpack.c.bf16 %v31_v23, %v30_v22  ;;  %vm313_vm6 = vmpackc.low %vm83_vm4, %vm352_vm5  ;;  %v217_v27 = vld [vmem:[#allocation3] sm:$0xff]  ;;  %v143_v33 = vld [vmem:[#allocation2] sm:$0xff]  ;;  %s244_s6 = sshll.u32 %s355_s1, 4  ;;  %s245_s6 = int_to_ptr.vmem [resolvable:$true] %s244_s6 }
   0xa   :  { %302 = vmatprep.subr.bf16.mxu0 %v350_v8  ;;  %s325_s7 = scalar_lea.vmem %s245_s6, 64  ;;  %p330_p1 = scmp.lt.s32.totalorder %s245_s6, %s245_s6 }
   0xb   :  { %p326_p0 = scmp.ne.s32.totalorder %s245_s6, %s325_s7  ;;  %p331_p2 = scmp.lt.s32.totalorder %s325_s7, %s325_s7 }
   0xd   :  { %304 = vmatpush3.bf16.msra.mxu0 %v303_v14  ;;  %p332_p3 = por %p331_p2, %p330_p1 }
   0xe   :  { %305 = vmatprep.subr.bf16.mxu0 %v350_v8 }
   0xf   :  { %p333_p4 = pnand %p332_p3, %p326_p0 }
  0x11   :  { %307 = vmatpush3.bf16.msra.mxu0 %v306_v17 }
  0x12   :  { %308 = vmatprep.subr.bf16.mxu0 %v350_v8 }
  0x15   :  { %310 = vmatpush3.bf16.msra.mxu0 %v309_v21 }
  0x16   :  { %311 = vmatprep.subr.bf16.mxu0 %v350_v8 }
  0x19   :  { %314 = vmatpush3.bf16.msk.msra.mxu0 %vm313_vm6, %v312_v24 }
  0x1c   :  { %294 = vmatmul.mubr.msk.f32.vlgmr.msra.gmra.mrb[0].mxu0 %vm140_vm3, %v354_v26 }
  0x94   :  { %v219_v28 = vpop.xlane.xlu0 %218 }
  0x95   :  { %v220_v29 = vadd.f32 %v219_v28, %v217_v27 }
  0x97   :  { %222 = vst.msk [vmem:[#allocation3] sm:$0xff] %vm18_vm0, %v220_v29 }
  0x9e   :  { %v227_v30 = vld [vmem:[#allocation3] sm:$0xf] }
  0x9f   :  { %v228_v31 = vmax.f32 %v227_v30, 1.0 }
  0xa1   :  { %323 = vrcp.f32 %v228_v31 }
  0xab   :  { %v324_v32 = vpop.eup %323 }
  0xac   :  { %232 = vperm.xlu0 %322, %v324_v32  }
  0xef   :  { %v210_v34 = vpop.f32.mrb[0].mxu0 }
  0xf0   :  { %v214_v35 = vadd.f32 %v210_v34, %v143_v33  ;;  %v295_v36 = vpop.f32.mrb[1].mxu0 }
  0xf2   :  { %216 = vst.msk [vmem:[#allocation2] sm:$0xff] %vm16_vm1, %v214_v35 }
  0xf9   :  { %v226_v37 = vld [vmem:[#allocation2] sm:$0xf] }
 0x12b   :  { %v233_v38 = vpop.permute.xlu0 %232 }
 0x12c   :  { %v235_v39 = vmul.f32 %v233_v38, %v226_v37 }
 0x12e   :  { %237 = vst.msk [vmem:[#allocation4] sm:$0xf] %vm236_vm7, %v235_v39 }
 0x12f   :  { %336 = shalt.err (!%p333_p4)
}
 0x130   :  { %s337_s10 = scalar_lea.hbm %s430_s2, 64 }
 0x131   :  { %p338_p5 = scmp.ne.s32.totalorder %s430_s2, %s337_s10  ;;  %p341_p6 = scmp.lt.u32.totalorder %s337_s10, %s430_s2 }
 0x133   :  { %p343_p7 = pnand %p341_p6, %p338_p5 }
 0x135   :  { %346 = shalt.err (!%p343_p7)
}
 0x136   :  { %247 = dma.vmem_to_hbm [thread:$0]  %s245_s6, 64, %s430_s2, [#allocation5]  }
 0x137   :  { %347 = dma.done.wait [#allocation5], 64  }
 0x138   :  { %348 = vsyncadd [#allocation5], 4294967232 }
 0x139   :  { %251 = vsyncpa [#allocation5], 1 }

</bundles_post_ra>
